<compile_context>
chip_gen: v7x
topology: tpu7x:2x2x1
jax: 0.10.0
libtpu: 0.0.40
codegen_flags: <defaults>
</compile_context>

<pallas_src>
import jax
import jax.numpy as jnp
from jax.experimental import pallas as pl
from jax.experimental.pallas import tpu as pltpu


def _chamfer_kernel(outputs_ref, dist_ref, part_ref):
    """One grid step over a (TB, H, W) slab of whole images.

    outputs_ref: (TB, H, W) raw predictions, native dtype
    dist_ref:    (TB, H, W) distance maps, native dtype
    part_ref:    (1, 1, 1)  f32 partial sum for this batch tile
    """
    # Binarize in native dtype (== PyTorch `(outputs >= 0.5).float()`).
    x = (outputs_ref[...] >= 0.5).astype(jnp.float32)          # (TB, H, W)

    # 3x3 Laplacian [[0,1,0],[1,-4,1],[0,1,0]], padding=1 (zeros), applied
    # independently per image: shifts only touch the H/W axes, never batch.
    zrow = jnp.zeros_like(x[:, :1, :])                          # (TB, 1, W)
    zcol = jnp.zeros_like(x[:, :, :1])                          # (TB, H, 1)
    up = jnp.concatenate([zrow, x[:, :-1, :]], axis=1)          # x[i-1, j]
    down = jnp.concatenate([x[:, 1:, :], zrow], axis=1)         # x[i+1, j]
    left = jnp.concatenate([zcol, x[:, :, :-1]], axis=2)        # x[i, j-1]
    right = jnp.concatenate([x[:, :, 1:], zcol], axis=2)        # x[i, j+1]
    lap = (up + down) + (left + right) - 4.0 * x

    # clamp(lap, 0, 255) > 0  is equivalent to  lap > 0.
    contour = lap > 0.0

    # Fused masked reduction over the whole tile.
    partial = jnp.sum(jnp.where(contour, dist_ref[...].astype(jnp.float32), 0.0))
    part_ref[...] = jnp.full(part_ref.shape, partial, dtype=part_ref.dtype)


def _pick_batch_tile(B, H, W, itemsize, target_bytes=2 * 1024 * 1024):
    """Largest divisor of B whose per-input tile stays under ~target_bytes."""
    best = 1
    for t in range(1, B + 1):
        if B % t == 0 and t * H * W * itemsize <= target_bytes:
            best = t
    return best


def chamfer_distance(outputs, dist_maps, *, batch_tile=None):
    """Pallas TPU implementation of ChamferDistance.forward.

    Args:
      outputs:   (B, H, W) float predictions (any float dtype).
      dist_maps: (B, H, W) float distance maps (any float dtype).
    Returns:
      scalar float32: sum(contours * dist_maps) / B.
    """
    assert outputs.shape == dist_maps.shape and outputs.ndim == 3
    B, H, W = outputs.shape

    if batch_tile is None:
        itemsize = max(jnp.dtype(outputs.dtype).itemsize,
                       jnp.dtype(dist_maps.dtype).itemsize)
        batch_tile = _pick_batch_tile(B, H, W, itemsize)
    assert B % batch_tile == 0
    num_tiles = B // batch_tile

    # Double-buffered pipeline footprint: 2 inputs x 2 buffers x tile bytes.
    tile_bytes = batch_tile * H * W * (
        jnp.dtype(outputs.dtype).itemsize + jnp.dtype(dist_maps.dtype).itemsize)
    vmem_limit = int(min(64 * 1024 * 1024,
                         max(32 * 1024 * 1024, 2 * tile_bytes + (1 << 20))))
    # TODO(synk): halo-tile H/W (overlap=1 for the 3x3 Laplacian) for images too
    # large for a whole (1, H, W) slab in VMEM (v7x: 64 MiB physical).

    partials = pl.pallas_call(
        _chamfer_kernel,
        out_shape=jax.ShapeDtypeStruct((num_tiles, 1, 1), jnp.float32),
        grid=(num_tiles,),
        in_specs=[
            pl.BlockSpec((batch_tile, H, W), lambda i: (i, 0, 0)),
            pl.BlockSpec((batch_tile, H, W), lambda i: (i, 0, 0)),
        ],
        out_specs=pl.BlockSpec((1, 1, 1), lambda i: (i, 0, 0)),
        compiler_params=pltpu.CompilerParams(
            dimension_semantics=("parallel",),  # independent per-tile outputs
            vmem_limit_bytes=vmem_limit,
        ),
    )(outputs, dist_maps)

    # Mean over batch in the wrapper: B scalars, negligible.
    return jnp.sum(partials) / jnp.float32(B)


def chamfer_distance_ref(outputs, dist_maps):
    """Pure-JAX reference mirroring the PyTorch module."""
    x = (outputs >= 0.5).astype(jnp.float32)
    xp = jnp.pad(x, ((0, 0), (1, 1), (1, 1)))
    lap = (xp[:, :-2, 1:-1] + xp[:, 2:, 1:-1]
           + xp[:, 1:-1, :-2] + xp[:, 1:-1, 2:]) - 4.0 * x
    contours = jnp.clip(lap, 0.0, 255.0) > 0.0
    dist = jnp.sum(jnp.where(contours, dist_maps.astype(jnp.float32), 0.0))
    return dist / x.shape[0]


if __name__ == "__main__":
    key = jax.random.PRNGKey(0)
    k1, k2 = jax.random.split(key)

    B, H, W = 2, 16, 16
    # Segmentation-probability-like predictions in [0, 1) and non-negative
    # distance maps.
    outputs = jax.random.uniform(k1, (B, H, W), dtype=jnp.float32)
    dist_maps = jnp.abs(jax.random.normal(k2, (B, H, W), dtype=jnp.float32))

    dist = jax.block_until_ready(chamfer_distance(outputs, dist_maps))
    dist_expected = jax.block_until_ready(chamfer_distance_ref(outputs, dist_maps))

    assert jnp.allclose(dist, dist_expected, rtol=1e-5, atol=1e-5), (
        dist,
        dist_expected,
    )
    assert float(dist) >= 0.0  # mirrors the module's `assert dist >= 0`
    print("KERNEL_OK")
</pallas_src>

<mosaic_0001>
module attributes {stable_mosaic.version = 11 : i64} {
  func.func @_chamfer_kernel(%arg0: i32, %arg1: memref<2x16x16xf32, #tpu.memory_space<vmem>>, %arg2: memref<2x16x16xf32, #tpu.memory_space<vmem>>, %arg3: memref<1x1x1xf32, #tpu.memory_space<vmem>>) attributes {dimension_semantics = [#tpu.dimension_semantics<parallel>], iteration_bounds = array<i64: 1>, scalar_prefetch = 0 : i64, scratch_operands = 0 : i64, tpu.core_type = #tpu.core_type<tc>, window_params = [{transform_indices = @transform_0, window_bounds = array<i64: 2, 16, 16>}, {transform_indices = @transform_1, window_bounds = array<i64: 2, 16, 16>}, {transform_indices = @transform_2, window_bounds = array<i64: 1, 1, 1>}]} {
    %c0 = arith.constant 0 : index
    %c0_0 = arith.constant 0 : index
    %c0_1 = arith.constant 0 : index
    %0 = vector.load %arg1[%c0, %c0_0, %c0_1] : memref<2x16x16xf32, #tpu.memory_space<vmem>>, vector<2x16x16xf32>
    %cst = arith.constant 5.000000e-01 : f32
    %1 = vector.broadcast %cst : f32 to vector<2x16x16xf32>
    %2 = arith.cmpf oge, %0, %1 : vector<2x16x16xf32>
    %3 = arith.extui %2 : vector<2x16x16xi1> to vector<2x16x16xi32>
    %4 = arith.sitofp %3 : vector<2x16x16xi32> to vector<2x16x16xf32>
    %cst_2 = arith.constant 0.000000e+00 : f32
    %5 = vector.broadcast %cst_2 : f32 to vector<2x1x16xf32>
    %cst_3 = arith.constant 0.000000e+00 : f32
    %6 = vector.broadcast %cst_3 : f32 to vector<2x16x1xf32>
    %7 = vector.extract_strided_slice %4 {offsets = [0, 0, 0], sizes = [2, 15, 16], strides = [1, 1, 1]} : vector<2x16x16xf32> to vector<2x15x16xf32>
    %8 = tpu.concatenate %5, %7 in 1 : vector<2x1x16xf32>, vector<2x15x16xf32> -> vector<2x16x16xf32>
    %9 = vector.extract_strided_slice %4 {offsets = [0, 1, 0], sizes = [2, 15, 16], strides = [1, 1, 1]} : vector<2x16x16xf32> to vector<2x15x16xf32>
    %10 = tpu.concatenate %9, %5 in 1 : vector<2x15x16xf32>, vector<2x1x16xf32> -> vector<2x16x16xf32>
    %11 = vector.extract_strided_slice %4 {offsets = [0, 0, 0], sizes = [2, 16, 15], strides = [1, 1, 1]} : vector<2x16x16xf32> to vector<2x16x15xf32>
    %12 = tpu.concatenate %6, %11 in 2 : vector<2x16x1xf32>, vector<2x16x15xf32> -> vector<2x16x16xf32>
    %13 = vector.extract_strided_slice %4 {offsets = [0, 0, 1], sizes = [2, 16, 15], strides = [1, 1, 1]} : vector<2x16x16xf32> to vector<2x16x15xf32>
    %14 = tpu.concatenate %13, %6 in 2 : vector<2x16x15xf32>, vector<2x16x1xf32> -> vector<2x16x16xf32>
    %15 = arith.addf %8, %10 : vector<2x16x16xf32>
    %16 = arith.addf %12, %14 : vector<2x16x16xf32>
    %17 = arith.addf %15, %16 : vector<2x16x16xf32>
    %cst_4 = arith.constant 4.000000e+00 : f32
    %18 = vector.broadcast %cst_4 : f32 to vector<2x16x16xf32>
    %19 = arith.mulf %18, %4 : vector<2x16x16xf32>
    %20 = arith.subf %17, %19 : vector<2x16x16xf32>
    %cst_5 = arith.constant 0.000000e+00 : f32
    %21 = vector.broadcast %cst_5 : f32 to vector<2x16x16xf32>
    %22 = arith.cmpf ogt, %20, %21 : vector<2x16x16xf32>
    %c0_6 = arith.constant 0 : index
    %c0_7 = arith.constant 0 : index
    %c0_8 = arith.constant 0 : index
    %23 = vector.load %arg2[%c0_6, %c0_7, %c0_8] : memref<2x16x16xf32, #tpu.memory_space<vmem>>, vector<2x16x16xf32>
    %cst_9 = arith.constant 0.000000e+00 : f32
    %24 = vector.broadcast %cst_9 : f32 to vector<2x16x16xf32>
    %25 = arith.select %22, %23, %24 : vector<2x16x16xi1>, vector<2x16x16xf32>
    %26 = vector.shape_cast %25 : vector<2x16x16xf32> to vector<1x2x16x16xf32>
    %cst_10 = arith.constant dense<0.000000e+00> : vector<1xf32>
    %27 = vector.multi_reduction <add>, %26, %cst_10 [1, 2, 3] : vector<1x2x16x16xf32> to vector<1xf32>
    %28 = vector.shape_cast %27 : vector<1xf32> to vector<1x1x1x1xf32>
    %29 = vector.extract %28[0, 0, 0, 0] : f32 from vector<1x1x1x1xf32>
    %30 = vector.broadcast %29 : f32 to vector<1x1x1xf32>
    %c0_11 = arith.constant 0 : index
    %c0_12 = arith.constant 0 : index
    %c0_13 = arith.constant 0 : index
    %31 = vector.load %arg3[%c0_11, %c0_12, %c0_13] : memref<1x1x1xf32, #tpu.memory_space<vmem>>, vector<1x1x1xf32>
    tpu.vector_store %arg3[%c0_11, %c0_12, %c0_13], %30 {strides = array<i32>} : memref<1x1x1xf32, #tpu.memory_space<vmem>>, vector<1x1x1xf32>,
    return
  }
  func.func @transform_0(%arg0: i32) -> (i32, i32, i32) {
    %c0_i32 = arith.constant 0 : i32
    %c0_i32_0 = arith.constant 0 : i32
    %c0_i32_1 = arith.constant 0 : i32
    return %arg0, %c0_i32, %c0_i32_0 : i32, i32, i32
  }
  func.func @transform_1(%arg0: i32) -> (i32, i32, i32) {
    %c0_i32 = arith.constant 0 : i32
    %c0_i32_0 = arith.constant 0 : i32
    %c0_i32_1 = arith.constant 0 : i32
    return %arg0, %c0_i32, %c0_i32_0 : i32, i32, i32
  }
  func.func @transform_2(%arg0: i32) -> (i32, i32, i32) {
    %c0_i32 = arith.constant 0 : i32
    %c0_i32_0 = arith.constant 0 : i32
    %c0_i32_1 = arith.constant 0 : i32
    return %arg0, %c0_i32, %c0_i32_0 : i32, i32, i32
  }
}

</mosaic_0001>

<bundles_post_ra>
// kernel: tpu_custom_call.1
= control target key start
LH: loop header
LB: loop body
LE: loop exit
PB: predicated region body
PF: predicated region fallthrough
CT: control target
= control target key end

     0   :  { %7 = vsyncpa [#allocation3], 0  ;;  %s364_s0 = inlined_call_operand.hbm [shape: f32[2,16,16], index: 0, kind: input, shape index: {}]   ;;  %s365_s1 = inlined_call_operand.hbm [shape: f32[2,16,16], index: 1, kind: input, shape index: {}]   ;;  %s366_s2 = inlined_call_operand.hbm [shape: f32[1,1,1], index: 2, kind: output, shape index: {}]  }
   0x1   :  { %8 = vsyncpa [#allocation6], 0 }
   0x2   :  { %9 = vsyncpa [#allocation4], 0  ;;  %s289_s9 = smov [#allocation2]   ;;  %s217_s13 = scalar_lea.hbm %s364_s0, 512 }
   0x3   :  { %s15_s10 = sshll.u32 %s289_s9, 4  ;;  %p218_p0 = scmp.ne.s32.totalorder %s364_s0, %s217_s13  ;;  %s16_s10 = int_to_ptr.vmem [resolvable:$true] %s15_s10 }
   0x4   :  { %p221_p1 = scmp.lt.u32.totalorder %s217_s13, %s364_s0 }
   0x6   :  { %p223_p2 = pnand %p221_p1, %p218_p0 }
   0x8   :  { %226 = shalt.err (!%p223_p2)
}
   0x9   :  { %s227_s18 = scalar_lea.vmem %s16_s10, 512  ;;  %p232_p4 = scmp.lt.s32.totalorder %s16_s10, %s16_s10 }
   0xa   :  { %p228_p3 = scmp.ne.s32.totalorder %s16_s10, %s227_s18  ;;  %p233_p5 = scmp.lt.s32.totalorder %s227_s18, %s227_s18 }
   0xc   :  { %p234_p6 = por %p233_p5, %p232_p4 }
   0xe   :  { %p235_p7 = pnand %p234_p6, %p228_p3 }
  0x10   :  { %238 = shalt.err (!%p235_p7)
}
  0x11   :  { %s290_s19 = smov 128   ;;  %s291_s20 = smov 8  }
  0x12   :  { %21 = dma.hbm_to_vmem [thread:$0]  %s364_s0, 512, %s16_s10, [#allocation3], %s290_s19, %s290_s19, %s291_s20  }
  0x13   :  { %s292_s23 = smov [#allocation5]   ;;  %s239_s27 = scalar_lea.hbm %s365_s1, 512 }
  0x14   :  { %s27_s24 = sshll.u32 %s292_s23, 4  ;;  %p240_p8 = scmp.ne.s32.totalorder %s365_s1, %s239_s27  ;;  %s28_s24 = int_to_ptr.vmem [resolvable:$true] %s27_s24 }
  0x15   :  { %p243_p9 = scmp.lt.u32.totalorder %s239_s27, %s365_s1 }
  0x17   :  { %p245_p10 = pnand %p243_p9, %p240_p8 }
  0x19   :  { %248 = shalt.err (!%p245_p10)
}
  0x1a   :  { %s249_s4 = scalar_lea.vmem %s28_s24, 512  ;;  %p254_p12 = scmp.lt.s32.totalorder %s28_s24, %s28_s24 }
  0x1b   :  { %p250_p11 = scmp.ne.s32.totalorder %s28_s24, %s249_s4  ;;  %p255_p13 = scmp.lt.s32.totalorder %s249_s4, %s249_s4 }
  0x1d   :  { %p256_p0 = por %p255_p13, %p254_p12 }
  0x1f   :  { %p257_p1 = pnand %p256_p0, %p250_p11 }
  0x21   :  { %260 = shalt.err (!%p257_p1)
}
  0x22   :  { %33 = dma.hbm_to_vmem [thread:$0]  %s365_s1, 512, %s28_s24, [#allocation6], %s290_s19, %s290_s19, %s291_s20  }
  0x23   :  { %283 = dma.done.wait [#allocation3], 512  }
  0x24   :  { %284 = vsyncadd [#allocation3], 4294966784 }
  0x25   :  { %285 = dma.done.wait [#allocation6], 512  }
  0x26   :  { %286 = vsyncadd [#allocation6], 4294966784  ;;  %v40_v0 = vld [vmem:[#allocation2] sm:$0xff]  ;;  %v41_v1 = vld [vmem:[#allocation2 + $0x8] sm:$0xff]  ;;  %vm73_vm3 = vcmask 1046528   ;;  %v293_v4 = vmov 0.0  }
  0x27   :  { %v42_v2 = vld [vmem:[#allocation2 + $0x10] sm:$0xff]  ;;  %vm44_vm0 = vcmp.ge.f32.partialorder %v40_v0, 0.5  ;;  %vm45_vm1 = vcmp.ge.f32.partialorder %v41_v1, 0.5  ;;  %v43_v3 = vld [vmem:[#allocation2 + $0x18] sm:$0xff]  ;;  %vm60_vm5 = vcmask 1040384   ;;  %s294_s1 = smov 1  }
  0x28   :  { %vm46_vm2 = vcmp.ge.f32.partialorder %v42_v2, 0.5  ;;  %v188_v5 = vsel %vm44_vm0, 1.0, %v293_v4  ;;  %v189_v6 = vsel %vm45_vm1, 1.0, %v293_v4  ;;  %vm47_vm4 = vcmp.ge.f32.partialorder %v43_v3, 0.5  ;;  %s295_s6 = smov 127   ;;  %v144_v1 = vld [vmem:[#allocation5] sm:$0xff] }
  0x29   :  { %v190_v7 = vsel %vm46_vm2, 1.0, %v293_v4  ;;  %v62_v8 = vrot.slane %v189_v6, 7  ;;  %v202_v9 = vpack.i.bf16 %v189_v6, %v188_v5  ;;  %v74_v10 = vrot.slane %v188_v5, 1  ;;  %v145_v2 = vld [vmem:[#allocation5 + $0x8] sm:$0xff]  ;;  %v146_v3 = vld [vmem:[#allocation5 + $0x10] sm:$0xff]  ;;  %s296_s7 = smov [#allocation7]  }
  0x2a   :  { %v191_v11 = vsel %vm47_vm4, 1.0, %v293_v4  ;;  %v75_v13 = vrot.slane %v189_v6, 1  ;;  %v61_v14 = vrot.slane %v188_v5, 7  ;;  %v64_v16 = vrot.slane %v190_v7, 7  ;;  %s178_s8 = sshll.u32 %s296_s7, 4  ;;  %s179_s8 = int_to_ptr.vmem [resolvable:$true] %s178_s8 }
  0x2b   :  { %v212_v12 = vpack.i.bf16 %v191_v11, %v190_v7  ;;  %203 = vrot.lane.b32.xlu0 %v202_v9, %s294_s1  ;;  %v78_v15 = vrot.slane %v191_v11, 1  ;;  %v77_v19 = vrot.slane %v190_v7, 1  ;;  %v65_v23 = vrot.slane %v191_v11, 7  ;;  %s261_s10 = scalar_lea.vmem %s179_s8, 16  ;;  %s265_s11 = scalar_lea.vmem %s179_s8, 32 }
  0x2c   :  { %v84_v17 = vsel %vm73_vm3, %v75_v13, 0.0  ;;  %v76_v18 = vsel %vm73_vm3, %v74_v10, %v75_v13  ;;  %v63_v20 = vsel %vm60_vm5, %v61_v14, %v62_v8  ;;  %v71_v21 = vsel %vm60_vm5, 0.0, %v61_v14  ;;  %p262_p2 = scmp.ne.s32.totalorder %s179_s8, %s261_s10  ;;  %p266_p3 = scmp.lt.s32.totalorder %s179_s8, %s179_s8 }
  0x2d   :  { %213 = vrot.lane.b32.xlu1 %v212_v12, %s294_s1  ;;  %v72_v22 = vsel %vm60_vm5, 0.0, %v64_v16  ;;  %v120_v24 = vadd.f32 %v76_v18, %v71_v21  ;;  %v121_v25 = vadd.f32 %v84_v17, %v63_v20  ;;  %v79_v26 = vsel %vm73_vm3, %v77_v19, %v78_v15  ;;  %p267_p4 = scmp.lt.s32.totalorder %s265_s11, %s261_s10 }
  0x2e   :  { %v85_v27 = vsel %vm73_vm3, %v78_v15, 0.0  ;;  %v122_v28 = vadd.f32 %v79_v26, %v72_v22  ;;  %v66_v29 = vsel %vm60_vm5, %v64_v16, %v65_v23  ;;  %vm98_vm6 = vcmask 7168  }
  0x2f   :  { %208 = vrot.lane.b32.xlu0 %v202_v9, %s295_s6  ;;  %v123_v30 = vadd.f32 %v85_v27, %v66_v29  ;;  %vm115_vm7 = vcmask 121856   ;;  %v134_v44 = vmul.f32 4.0, %v190_v7  ;;  %v133_v49 = vmul.f32 4.0, %v189_v6  ;;  %p268_p5 = por %p267_p4, %p266_p3 }
  0x30   :  { %v132_v52 = vmul.f32 4.0, %v188_v5  ;;  %v135_v60 = vmul.f32 4.0, %v191_v11  ;;  %vm152_vm9 = vcmask 130048   ;;  %v147_v5 = vld [vmem:[#allocation5 + $0x18] sm:$0xff]  ;;  %vm170_vm13 = vcmask 0  }
  0x31   :  { %107 = vrot.lane.b32.xlu1 %v190_v7, %s295_s6  ;;  %p269_p6 = pnand %p268_p5, %p262_p2 }
  0x33   :  { %109 = vrot.lane.b32.xlu0 %v191_v11, %s295_s6 }
  0x9d   :  { %v204_v31 = vpop.permute.xlu0 %203 }
  0x9e   :  { %v206_v33 = vunpack.i.h.bf16 %v204_v31  ;;  %v205_v35 = vunpack.i.l.bf16 %v204_v31 }
  0x9f   :  { %v214_v32 = vpop.permute.xlu1 %213 }
  0xa0   :  { %v215_v34 = vunpack.i.l.bf16 %v214_v32  ;;  %v216_v38 = vunpack.i.h.bf16 %v214_v32  ;;  %v100_v42 = vsel %vm98_vm6, 0.0, %v206_v33  ;;  %v99_v45 = vsel %vm98_vm6, 0.0, %v205_v35 }
  0xa1   :  { %v209_v36 = vpop.permute.xlu0 %208 }
  0xa2   :  { %v101_v37 = vsel %vm98_vm6, 0.0, %v215_v34  ;;  %v211_v39 = vunpack.i.h.bf16 %v209_v36  ;;  %v210_v40 = vunpack.i.l.bf16 %v209_v36  ;;  %v102_v55 = vsel %vm98_vm6, 0.0, %v216_v38 }
  0xa3   :  { %v108_v41 = vpop.permute.xlu1 %107 }
  0xa4   :  { %v118_v43 = vsel %vm115_vm7, %v108_v41, 0.0  ;;  %v117_v46 = vsel %vm115_vm7, %v211_v39, 0.0  ;;  %v116_v47 = vsel %vm115_vm7, %v210_v40, 0.0 }
  0xa5   :  { %v126_v48 = vadd.f32 %v118_v43, %v101_v37  ;;  %v124_v50 = vadd.f32 %v116_v47, %v99_v45  ;;  %v125_v51 = vadd.f32 %v117_v46, %v100_v42  ;;  %v110_v53 = vpop.permute.xlu0 %109 }
  0xa6   :  { %v119_v56 = vsel %vm115_vm7, %v110_v53, 0.0 }
  0xa7   :  { %v130_v54 = vadd.f32 %v126_v48, %v122_v28  ;;  %v128_v57 = vadd.f32 %v124_v50, %v120_v24  ;;  %v129_v58 = vadd.f32 %v125_v51, %v121_v25  ;;  %v127_v59 = vadd.f32 %v119_v56, %v102_v55 }
  0xa9   :  { %v138_v61 = vsub.f32 %v130_v54, %v134_v44  ;;  %v136_v62 = vsub.f32 %v128_v57, %v132_v52  ;;  %v137_v63 = vsub.f32 %v129_v58, %v133_v49  ;;  %v131_v0 = vadd.f32 %v127_v59, %v123_v30 }
  0xab   :  { %vm142_vm8 = vcmp.gt.f32.partialorder %v138_v61, 0.0  ;;  %v139_v4 = vsub.f32 %v131_v0, %v135_v60  ;;  %vm140_vm10 = vcmp.gt.f32.partialorder %v136_v62, 0.0  ;;  %vm141_vm11 = vcmp.gt.f32.partialorder %v137_v63, 0.0 }
  0xac   :  { %v148_v6 = vsel %vm140_vm10, %v144_v1, 0.0  ;;  %v149_v7 = vsel %vm141_vm11, %v145_v2, 0.0  ;;  %v150_v8 = vsel %vm142_vm8, %v146_v3, 0.0 }
  0xad   :  { %vm143_vm12 = vcmp.gt.f32.partialorder %v139_v4, 0.0  ;;  %v153_v9 = vsel %vm152_vm9, %v148_v6, 0.0  ;;  %v154_v10 = vsel %vm152_vm9, %v149_v7, 0.0  ;;  %v156_v13 = vsel %vm152_vm9, %v150_v8, 0.0 }
  0xae   :  { %v151_v11 = vsel %vm143_vm12, %v147_v5, 0.0  ;;  %v155_v12 = vadd.f32 %v154_v10, %v153_v9 }
  0xaf   :  { %v158_v15 = vsel %vm152_vm9, %v151_v11, 0.0 }
  0xb0   :  { %v157_v14 = vadd.f32 %v156_v13, %v155_v12 }
  0xb2   :  { %v159_v16 = vadd.f32 %v158_v15, %v157_v14 }
  0xb4   :  { %160 = vadd.xlane.f32.xlu1 %v159_v16 }
 0x141   :  { %v161_v17 = vpop.xlane.xlu1 %160 }
 0x142   :  { %v162_v18 = vrot.slane %v161_v17, 4 }
 0x144   :  { %v163_v19 = vadd.f32 %v162_v18, %v161_v17 }
 0x146   :  { %v164_v20 = vrot.slane %v163_v19, 2 }
 0x148   :  { %v165_v21 = vadd.f32 %v164_v20, %v163_v19 }
 0x14a   :  { %v166_v22 = vrot.slane %v165_v21, 1 }
 0x14c   :  { %v167_v23 = vadd.f32 %v166_v22, %v165_v21 }
 0x14e   :  { %192 = vpush %v167_v23 }
 0x17f   :  { %s193_s9 = spop %192 }
 0x180   :  { %v169_v24 = vstv %s193_s9 }
 0x181   :  { %171 = vst.msk [vmem:[#allocation7] sm:$0x1] %vm170_vm13, %v169_v24 }
 0x182   :  { %272 = shalt.err (!%p269_p6)
}
 0x183   :  { %s273_s14 = scalar_lea.hbm %s366_s2, 16 }
 0x184   :  { %p274_p7 = scmp.ne.s32.totalorder %s366_s2, %s273_s14  ;;  %p277_p8 = scmp.lt.u32.totalorder %s273_s14, %s366_s2 }
 0x186   :  { %p279_p9 = pnand %p277_p8, %p274_p7 }
 0x188   :  { %282 = shalt.err (!%p279_p9)
}
 0x189   :  { %181 = dma.vmem_to_hbm [thread:$0]  %s179_s8, 16, %s366_s2, [#allocation4]  }
 0x18a   :  { %287 = dma.done.wait [#allocation4], 16  }
 0x18b   :  { %288 = vsyncadd [#allocation4], 4294967280 }
 0x18c   :  { %185 = vsyncpa [#allocation3], 1 }
 0x18d   :  { %186 = vsyncpa [#allocation6], 1 }
 0x18e   :  { %187 = vsyncpa [#allocation4], 1 }

</bundles_post_ra>
